<compile_context>
chip_gen: v5e
topology: v5e:2x2
jax: 0.10.0
libtpu: 0.0.40
codegen_flags: <defaults>
</compile_context>

<pallas_src>
import math
import functools

import jax
import jax.numpy as jnp
from jax.experimental import pallas as pl
from jax.experimental.pallas import tpu as pltpu

LANE = 128


def _round_up(x, m):
    return (x + m - 1) // m * m


def mlp_kernel(x_ref, w1_ref, b1_ref, w2_ref, b2_ref, o_ref):
    # hidden = relu(x @ W1 + b1): bf16 MXU feeds, f32 accumulate, f32 VPU math.
    h = jnp.dot(x_ref[...], w1_ref[...], preferred_element_type=jnp.float32)
    h = jnp.maximum(h + b1_ref[...], 0.0)
    # out = hidden @ W2 + b2: hidden cast back to bf16 to feed the MXU.
    out = jnp.dot(h.astype(w2_ref.dtype), w2_ref[...],
                  preferred_element_type=jnp.float32)
    o_ref[...] = (out + b2_ref[...]).astype(o_ref.dtype)


def prepare_params(w1, b1, w2, b2):
    """One-time parameter prep (call once, reuse across forward calls).

    Pads the hidden dim to a multiple of 128 lanes and casts weights to bf16
    for the MXU; biases stay f32 for the VPU.  Padding is mathematically exact.
    """
    f, h = w1.shape
    o = w2.shape[1]
    hp = _round_up(h, LANE)
    w1p = jnp.zeros((f, hp), jnp.bfloat16).at[:, :h].set(w1.astype(jnp.bfloat16))
    b1p = jnp.zeros((1, hp), jnp.float32).at[:, :h].set(
        jnp.reshape(b1, (1, h)).astype(jnp.float32))
    w2p = jnp.zeros((hp, o), jnp.bfloat16).at[:h, :].set(w2.astype(jnp.bfloat16))
    b2p = jnp.reshape(b2, (1, o)).astype(jnp.float32)
    return w1p, b1p, w2p, b2p


def _choose_row_tile(n, row_tile):
    # Biggest tile wins (fewer ~0.35us grid steps); multiple of 8 (sublane).
    tn = _round_up(min(row_tile, n), 8)
    # v7x megacore: grid=(1,) leaves one TensorCore idle; split into >=2 steps
    # once there is enough work to pay for it (harmless on single-TC v5e/v6e).
    if n >= 256 and _round_up(n, tn) // tn < 2:
        tn = _round_up((n + 1) // 2, 8)
    return tn


@functools.partial(jax.jit, static_argnames=("row_tile",))
def net_forward(x, w1p, b1p, w2p, b2p, *, row_tile=512):
    """Pallas forward of Net: relu(x @ W1 + b1) @ W2 + b2.

    Expects parameters from `prepare_params` (bf16 weights, lane-padded hidden
    dim).  x may be f32; it is cast to bf16 here.
    """
    n, f = x.shape
    hp = w1p.shape[1]
    o = w2p.shape[1]

    tn = _choose_row_tile(n, row_tile)
    n_rows = _round_up(n, tn)

    xb = x.astype(jnp.bfloat16)
    if n_rows != n:  # static check: pad trailing rows only when required
        xb = jnp.pad(xb, ((0, n_rows - n), (0, 0)))

    out = pl.pallas_call(
        mlp_kernel,
        out_shape=jax.ShapeDtypeStruct((n_rows, o), jnp.float32),
        grid_spec=pltpu.PrefetchScalarGridSpec(
            num_scalar_prefetch=0,
            grid=(n_rows // tn,),
            in_specs=[
                pl.BlockSpec((tn, f), lambda i: (i, 0)),   # x rows: pipelined
                pl.BlockSpec((f, hp), lambda i: (0, 0)),   # W1: VMEM-resident
                pl.BlockSpec((1, hp), lambda i: (0, 0)),   # b1
                pl.BlockSpec((hp, o), lambda i: (0, 0)),   # W2: VMEM-resident
                pl.BlockSpec((1, o), lambda i: (0, 0)),    # b2
            ],
            out_specs=pl.BlockSpec((tn, o), lambda i: (i, 0)),  # real cols only
        ),
        compiler_params=pltpu.CompilerParams(
            dimension_semantics=("parallel",),  # 2 TCs on v7x; no-op elsewhere
        ),
    )(xb, w1p, b1p, w2p, b2p)
    return out[:n] if n_rows != n else out


def init_params(key, n_feature, n_hidden, n_output):
    """Deterministic init mirroring torch.nn.Linear's U(-1/sqrt(fan_in), 1/sqrt(fan_in))."""
    k1, k2, k3, k4 = jax.random.split(key, 4)
    bound1 = 1.0 / math.sqrt(n_feature)
    bound2 = 1.0 / math.sqrt(n_hidden)
    w1 = jax.random.uniform(k1, (n_feature, n_hidden), jnp.float32, -bound1, bound1)
    b1 = jax.random.uniform(k2, (1, n_hidden), jnp.float32, -bound1, bound1)
    w2 = jax.random.uniform(k3, (n_hidden, n_output), jnp.float32, -bound2, bound2)
    b2 = jax.random.uniform(k4, (1, n_output), jnp.float32, -bound2, bound2)
    return w1, b1, w2, b2


def reference_forward(x, w1, b1, w2, b2, emulate_bf16):
    if emulate_bf16:  # emulate bf16 MXU feeds + f32 accumulation (tight check)
        xr = x.astype(jnp.bfloat16).astype(jnp.float32)
        w1r = w1.astype(jnp.bfloat16).astype(jnp.float32)
        w2r = w2.astype(jnp.bfloat16).astype(jnp.float32)
        h = jnp.maximum(xr @ w1r + b1, 0.0)
        return h.astype(jnp.bfloat16).astype(jnp.float32) @ w2r + b2
    return jnp.maximum(x @ w1 + b1, 0.0) @ w2 + b2  # pure f32 module math


def _run_case(x, w1, b1, w2, b2, row_tile):
    params = prepare_params(w1, b1, w2, b2)   # one-time prep, outside forward
    out = jax.block_until_ready(net_forward(x, *params, row_tile=row_tile))
    assert out.shape == (x.shape[0], w2.shape[1])
    ref_bf16 = reference_forward(x, w1, b1, w2, b2, emulate_bf16=True)
    ref_f32 = reference_forward(x, w1, b1, w2, b2, emulate_bf16=False)
    assert jnp.allclose(out, ref_bf16, atol=2e-3, rtol=2e-3), "bf16-emulated ref mismatch"
    assert jnp.allclose(out, ref_f32, atol=5e-2, rtol=5e-2), "f32 ref mismatch"
    return out


if __name__ == "__main__":
    key = jax.random.PRNGKey(0)
    k1, k2, k3 = jax.random.split(key, 3)

    # Case 1: the spec's regression setup -- x = linspace(-1, 1, 100)[:, None],
    # Net(n_feature=1, n_hidden=10, n_output=1).  Exercises the trailing-row
    # padding + slice path (single 104-row grid step).
    x1 = jnp.linspace(-1.0, 1.0, 100, dtype=jnp.float32).reshape(100, 1)
    p1 = init_params(k1, 1, 10, 1)
    _run_case(x1, *p1, row_tile=512)

    # Case 2: wider layer, N=512, Net(8, 32, 4).  The tile halves to 256 so the
    # grid has two "parallel" steps (v7x megacore) and the x/out pipeline is
    # exercised; N % tile == 0 so no x padding copy is emitted.
    x2 = jax.random.normal(k2, (512, 8), jnp.float32)
    p2 = init_params(k3, 8, 32, 4)
    _run_case(x2, *p2, row_tile=512)

    print("KERNEL_OK")
</pallas_src>

<mosaic_0001>
module attributes {stable_mosaic.version = 11 : i64} {
  func.func @mlp_kernel(%arg0: i32, %arg1: memref<104x1xbf16, #tpu.memory_space<vmem>>, %arg2: memref<1x128xbf16, #tpu.memory_space<vmem>>, %arg3: memref<1x128xf32, #tpu.memory_space<vmem>>, %arg4: memref<128x1xbf16, #tpu.memory_space<vmem>>, %arg5: memref<1x1xf32, #tpu.memory_space<vmem>>, %arg6: memref<104x1xf32, #tpu.memory_space<vmem>>) attributes {dimension_semantics = [#tpu.dimension_semantics<parallel>], iteration_bounds = array<i64: 1>, scalar_prefetch = 0 : i64, scratch_operands = 0 : i64, tpu.core_type = #tpu.core_type<tc>, window_params = [{transform_indices = @transform_0, window_bounds = array<i64: 104, 1>}, {pipeline_mode = #tpu.pipeline_mode<synchronous>, transform_indices = @transform_1, window_bounds = array<i64: 1, 128>}, {pipeline_mode = #tpu.pipeline_mode<synchronous>, transform_indices = @transform_2, window_bounds = array<i64: 1, 128>}, {pipeline_mode = #tpu.pipeline_mode<synchronous>, transform_indices = @transform_3, window_bounds = array<i64: 128, 1>}, {pipeline_mode = #tpu.pipeline_mode<synchronous>, transform_indices = @transform_4, window_bounds = array<i64: 1, 1>}, {transform_indices = @transform_5, window_bounds = array<i64: 104, 1>}]} {
    %c0 = arith.constant 0 : index
    %c0_0 = arith.constant 0 : index
    %0 = vector.load %arg1[%c0, %c0_0] : memref<104x1xbf16, #tpu.memory_space<vmem>>, vector<104x1xbf16>
    %c0_1 = arith.constant 0 : index
    %c0_2 = arith.constant 0 : index
    %1 = vector.load %arg2[%c0_1, %c0_2] : memref<1x128xbf16, #tpu.memory_space<vmem>>, vector<1x128xbf16>
    %cst = arith.constant dense<0.000000e+00> : vector<104x128xf32>
    %2 = tpu.matmul %0, %1, %cst {dimension_numbers = #tpu.dot_dimension_numbers<[1], [0], [0], [1], [0, 0, 1, 1], [], []>} : vector<104x1xbf16>, vector<1x128xbf16>, vector<104x128xf32> -> vector<104x128xf32>
    %c0_3 = arith.constant 0 : index
    %c0_4 = arith.constant 0 : index
    %3 = vector.load %arg3[%c0_3, %c0_4] : memref<1x128xf32, #tpu.memory_space<vmem>>, vector<1x128xf32>
    %4 = vector.broadcast %3 : vector<1x128xf32> to vector<104x128xf32>
    %5 = arith.addf %2, %4 : vector<104x128xf32>
    %cst_5 = arith.constant 0.000000e+00 : f32
    %6 = vector.broadcast %cst_5 : f32 to vector<104x128xf32>
    %7 = arith.maximumf %5, %6 : vector<104x128xf32>
    %8 = arith.truncf %7 : vector<104x128xf32> to vector<104x128xbf16>
    %c0_6 = arith.constant 0 : index
    %c0_7 = arith.constant 0 : index
    %9 = vector.load %arg4[%c0_6, %c0_7] : memref<128x1xbf16, #tpu.memory_space<vmem>>, vector<128x1xbf16>
    %cst_8 = arith.constant dense<0.000000e+00> : vector<104x1xf32>
    %10 = tpu.matmul %8, %9, %cst_8 {dimension_numbers = #tpu.dot_dimension_numbers<[1], [0], [0], [1], [0, 0, 1, 1], [], []>} : vector<104x128xbf16>, vector<128x1xbf16>, vector<104x1xf32> -> vector<104x1xf32>
    %c0_9 = arith.constant 0 : index
    %c0_10 = arith.constant 0 : index
    %11 = vector.load %arg5[%c0_9, %c0_10] : memref<1x1xf32, #tpu.memory_space<vmem>>, vector<1x1xf32>
    %12 = vector.broadcast %11 : vector<1x1xf32> to vector<104x1xf32>
    %13 = arith.addf %10, %12 : vector<104x1xf32>
    %c0_11 = arith.constant 0 : index
    %c0_12 = arith.constant 0 : index
    %14 = vector.load %arg6[%c0_11, %c0_12] : memref<104x1xf32, #tpu.memory_space<vmem>>, vector<104x1xf32>
    tpu.vector_store %arg6[%c0_11, %c0_12], %13 {strides = array<i32>} : memref<104x1xf32, #tpu.memory_space<vmem>>, vector<104x1xf32>,
    return
  }
  func.func @transform_0(%arg0: i32) -> (i32, i32) {
    %c0_i32 = arith.constant 0 : i32
    %c0_i32_0 = arith.constant 0 : i32
    return %arg0, %c0_i32 : i32, i32
  }
  func.func @transform_1(%arg0: i32) -> (i32, i32) {
    %c0_i32 = arith.constant 0 : i32
    %c0_i32_0 = arith.constant 0 : i32
    %c0_i32_1 = arith.constant 0 : i32
    return %c0_i32, %c0_i32_0 : i32, i32
  }
  func.func @transform_2(%arg0: i32) -> (i32, i32) {
    %c0_i32 = arith.constant 0 : i32
    %c0_i32_0 = arith.constant 0 : i32
    %c0_i32_1 = arith.constant 0 : i32
    return %c0_i32, %c0_i32_0 : i32, i32
  }
  func.func @transform_3(%arg0: i32) -> (i32, i32) {
    %c0_i32 = arith.constant 0 : i32
    %c0_i32_0 = arith.constant 0 : i32
    %c0_i32_1 = arith.constant 0 : i32
    return %c0_i32, %c0_i32_0 : i32, i32
  }
  func.func @transform_4(%arg0: i32) -> (i32, i32) {
    %c0_i32 = arith.constant 0 : i32
    %c0_i32_0 = arith.constant 0 : i32
    %c0_i32_1 = arith.constant 0 : i32
    return %c0_i32, %c0_i32_0 : i32, i32
  }
  func.func @transform_5(%arg0: i32) -> (i32, i32) {
    %c0_i32 = arith.constant 0 : i32
    %c0_i32_0 = arith.constant 0 : i32
    return %arg0, %c0_i32 : i32, i32
  }
}

</mosaic_0001>

<bundles_post_ra>
// kernel: net_forward.1
= control target key start
LH: loop header
LB: loop body
LE: loop exit
PB: predicated region body
PF: predicated region fallthrough
CT: control target
= control target key end

     0   :  { %vm96_vm0 = vcmask 1040384   ;;  %v390_v1 = vmov 0   ;;  %vm74_vm1 = vcmask 7168   ;;  %s534_s1 = inlined_call_operand.vmem [shape: bf16[1,128], index: 1, kind: input, shape index: {}]   ;;  %s535_s0 = inlined_call_operand.vmem [shape: bf16[104,1], index: 0, kind: input, shape index: {}]   ;;  %s536_s2 = inlined_call_operand.vmem [shape: f32[1,128], index: 2, kind: input, shape index: {}]   ;;  %s537_s3 = inlined_call_operand.vmem [shape: bf16[128,1], index: 3, kind: input, shape index: {}]   ;;  %s538_s4 = inlined_call_operand.<no memory space> [shape: f32[1,1], index: 4, kind: input, shape index: {}]   ;;  %s539_s5 = inlined_call_operand.vmem [shape: f32[104,1], index: 5, kind: output, shape index: {}]  }
   0x1   :  { %v36_v0 = vld [vmem:[%s534_s1] sm:$0x1]  ;;  %v98_v2 = vsel %vm96_vm0, 65535, %v390_v1  ;;  %v357_v5 = vld [vmem:[%s535_s0 + $0x8] sm:$0xff]  ;;  %v358_v7 = vld [vmem:[%s535_s0 + $0x10] sm:$0xff]  ;;  %v10_v57 = vstv %s538_s4 }
   0x2   :  { %v100_v3 = vand.u32 %v98_v2, %v36_v0  ;;  %v356_v4 = vld [vmem:[%s535_s0] sm:$0xff]  ;;  %v361_v6 = vld [vmem:[%s535_s0 + $0x28] sm:$0xff]  ;;  %v35_v8 = vld [vmem:[%s535_s0 + $0x30] sm:$0xf]  ;;  %11 = vst [vmem:[#allocation2] sm:$0x1] %v10_v57 }
   0x3   :  { %v369_v9 = vld [vmem:[%s537_s3 + $0x38] sm:$0xff]  ;;  %v66_v10 = vunpack.c.l.b16 %v35_v8  ;;  %v368_v11 = vld [vmem:[%s537_s3 + $0x30] sm:$0xff]  ;;  %v367_v13 = vld [vmem:[%s537_s3 + $0x28] sm:$0xff] }
   0x4   :  { %109 = vmatpush.bf16.msra.mxu0 %v100_v3  ;;  %370 = vmatpush.bf16.msra.mxu3 %v100_v3  ;;  %v366_v14 = vld [vmem:[%s537_s3 + $0x20] sm:$0xff]  ;;  %v359_v15 = vld [vmem:[%s535_s0 + $0x18] sm:$0xff]  ;;  %v364_v18 = vld [vmem:[%s537_s3 + $0x10] sm:$0xff] }
   0x5   :  { %233 = vmatpush.bf16.msra.mxu1 %v369_v9  ;;  %371 = vmatpush.bf16.msra.mxu2 %v369_v9  ;;  %v73_v12 = vpack.c.b16 %v66_v10, %v66_v10  ;;  %v360_v16 = vld [vmem:[%s535_s0 + $0x20] sm:$0xff]  ;;  %v365_v17 = vld [vmem:[%s537_s3 + $0x18] sm:$0xff]  ;;  %v363_v19 = vld [vmem:[%s537_s3 + $0x8] sm:$0xff] }
   0x6   :  { %v362_v20 = vld [vmem:[%s537_s3] sm:$0xff] }
   0x7   :  { %317 = vmatmul.msk.bf16.vlgmr.msra.gmra.mxu0 %vm74_vm1, %v356_v4  ;;  %322 = vmatmul.msk.bf16.vlgmr.msra.gmra.mxu3 %vm74_vm1, %v361_v6  ;;  %v388_v22 = vld [vmem:[%s536_s2] ss:$0 sm:$0xff] }
   0x8   :  { %372 = vmatpush.bf16.msrb.mxu3 %v369_v9 }
   0x9   :  { %234 = vmatpush.bf16.msra.mxu1 %v368_v11  ;;  %373 = vmatpush.bf16.msra.mxu2 %v368_v11  ;;  %v389_v6 = vld [vmem:[#allocation2] ss:$0 sm:$0xff] }
   0xc   :  { %374 = vmatpush.bf16.msrb.mxu3 %v368_v11 }
   0xd   :  { %235 = vmatpush.bf16.msra.mxu1 %v367_v13  ;;  %375 = vmatpush.bf16.msra.mxu2 %v367_v13 }
  0x10   :  { %376 = vmatpush.bf16.msrb.mxu3 %v367_v13 }
  0x11   :  { %236 = vmatpush.bf16.msra.mxu1 %v366_v14  ;;  %377 = vmatpush.bf16.msra.mxu2 %v366_v14 }
  0x14   :  { %378 = vmatpush.bf16.msrb.mxu3 %v366_v14 }
  0x15   :  { %237 = vmatpush.bf16.msra.mxu1 %v365_v17  ;;  %379 = vmatpush.bf16.msra.mxu2 %v365_v17 }
  0x17   :  { %318 = vmatmul.msk.bf16.gmra.mxu0 %vm74_vm1, %v357_v5  ;;  %323 = vmatmul.msk.bf16.gmra.mxu3 %vm74_vm1, %v73_v12 }
  0x18   :  { %380 = vmatpush.bf16.msrb.mxu3 %v365_v17 }
  0x19   :  { %238 = vmatpush.bf16.msra.mxu1 %v364_v18  ;;  %381 = vmatpush.bf16.msra.mxu2 %v364_v18 }
  0x1c   :  { %382 = vmatpush.bf16.msrb.mxu3 %v364_v18 }
  0x1d   :  { %239 = vmatpush.bf16.msra.mxu1 %v363_v19  ;;  %383 = vmatpush.bf16.msra.mxu2 %v363_v19 }
  0x20   :  { %384 = vmatpush.bf16.msrb.mxu3 %v363_v19 }
  0x21   :  { %240 = vmatpush.bf16.msra.mxu1 %v362_v20  ;;  %385 = vmatpush.bf16.msra.mxu2 %v362_v20 }
  0x24   :  { %386 = vmatpush.bf16.msrb.mxu3 %v362_v20 }
  0x27   :  { %319 = vmatmul.msk.bf16.gmra.mxu0 %vm74_vm1, %v358_v7 }
  0x37   :  { %320 = vmatmul.msk.bf16.gmra.mxu0 %vm74_vm1, %v359_v15 }
  0x47   :  { %321 = vmatmul.msk.bf16.gmra.mxu0 %vm74_vm1, %v360_v16 }
  0x84   :  { %v111_v21 = vpop.f32.mrf.mxu0 }
  0x85   :  { %v112_v23 = vadd.f32 %v388_v22, %v111_v21 }
  0x87   :  { %v145_v26 = vmax.f32 %v112_v23, 0.0 }
  0x8a   :  { %v136_v37 = vpop.f32.mrf.mxu3 }
  0x8b   :  { %v137_v1 = vadd.f32 %v388_v22, %v136_v37 }
  0x8c   :  { %v113_v24 = vpop.f32.mrf.mxu0 }
  0x8d   :  { %v114_v25 = vadd.f32 %v388_v22, %v113_v24  ;;  %v155_v3 = vmax.f32 %v137_v1, 0.0 }
  0x8f   :  { %v146_v27 = vmax.f32 %v114_v25, 0.0 }
  0x91   :  { %v158_v28 = vpack.c.bf16 %v146_v27, %v145_v26 }
  0x92   :  { %v138_v43 = vpop.f32.mrf.mxu3 }
  0x93   :  { %241 = vmatmul.bf16.vlgmr.msra.gmra.mxu1 %v158_v28  ;;  %v139_v2 = vadd.f32 %v388_v22, %v138_v43 }
  0x94   :  { %v116_v29 = vpop.f32.mrf.mxu0 }
  0x95   :  { %v117_v30 = vadd.f32 %v388_v22, %v116_v29  ;;  %v156_v4 = vmax.f32 %v139_v2, 0.0 }
  0x97   :  { %v147_v33 = vmax.f32 %v117_v30, 0.0  ;;  %v163_v5 = vpack.c.bf16 %v156_v4, %v155_v3 }
  0x9a   :  { %v141_v46 = vpop.f32.mrf.mxu3 }
  0x9b   :  { %v142_v47 = vadd.f32 %v388_v22, %v141_v46 }
  0x9c   :  { %v118_v31 = vpop.f32.mrf.mxu0 }
  0x9d   :  { %v119_v32 = vadd.f32 %v388_v22, %v118_v31  ;;  %v157_v48 = vmax.f32 %v142_v47, 0.0 }
  0x9f   :  { %v148_v34 = vmax.f32 %v119_v32, 0.0  ;;  %v164_v51 = vpack.c.bf16 %v157_v48, %v157_v48 }
  0xa1   :  { %v159_v35 = vpack.c.bf16 %v148_v34, %v147_v33  ;;  %271 = vmatmul.bf16.vlgmr.msrb.gmra.mxu3 %v164_v51 }
  0xa2   :  { %v143_v55 = vpop.f32.mrf.mxu3 }
  0xa3   :  { %246 = vmatmul.bf16.gmra.mxu1 %v159_v35 }
  0xa4   :  { %v121_v36 = vpop.f32.mrf.mxu0 }
  0xa5   :  { %v122_v38 = vadd.f32 %v388_v22, %v121_v36 }
  0xa7   :  { %v149_v41 = vmax.f32 %v122_v38, 0.0 }
  0xac   :  { %v123_v39 = vpop.f32.mrf.mxu0 }
  0xad   :  { %v124_v40 = vadd.f32 %v388_v22, %v123_v39 }
  0xaf   :  { %v150_v42 = vmax.f32 %v124_v40, 0.0 }
  0xb1   :  { %v160_v44 = vpack.c.bf16 %v150_v42, %v149_v41 }
  0xb3   :  { %251 = vmatmul.bf16.gmra.mxu1 %v160_v44 }
  0xb4   :  { %v126_v45 = vpop.f32.mrf.mxu0 }
  0xb5   :  { %v127_v49 = vadd.f32 %v388_v22, %v126_v45 }
  0xb7   :  { %v151_v53 = vmax.f32 %v127_v49, 0.0 }
  0xbc   :  { %v128_v50 = vpop.f32.mrf.mxu0 }
  0xbd   :  { %v129_v52 = vadd.f32 %v388_v22, %v128_v50 }
  0xbf   :  { %v152_v54 = vmax.f32 %v129_v52, 0.0 }
  0xc1   :  { %v161_v56 = vpack.c.bf16 %v152_v54, %v151_v53 }
  0xc3   :  { %256 = vmatmul.bf16.vlgmr.msra.gmra.mxu2 %v161_v56 }
  0xc4   :  { %v131_v58 = vpop.f32.mrf.mxu0 }
  0xc5   :  { %v132_v59 = vadd.f32 %v388_v22, %v131_v58 }
  0xc7   :  { %v153_v62 = vmax.f32 %v132_v59, 0.0 }
  0xcc   :  { %v133_v60 = vpop.f32.mrf.mxu0 }
  0xcd   :  { %v134_v61 = vadd.f32 %v388_v22, %v133_v60 }
  0xcf   :  { %v154_v63 = vmax.f32 %v134_v61, 0.0 }
  0xd1   :  { %v162_v0 = vpack.c.bf16 %v154_v63, %v153_v62 }
  0xd3   :  { %261 = vmatmul.bf16.gmra.mxu2 %v162_v0 }
  0xe3   :  { %266 = vmatmul.bf16.gmra.mxu2 %v163_v5 }
 0x110   :  { %v242_v7 = vpop.f32.mrf.mxu1 }
 0x111   :  { %v243_v8 = vadd.f32 %v389_v6, %v242_v7 }
 0x113   :  { %276 = vst.msk [vmem:[%s539_s5] sm:$0xff] %vm74_vm1, %v243_v8 }
 0x118   :  { %v244_v9 = vpop.f32.mrf.mxu1 }
 0x119   :  { %v245_v10 = vadd.f32 %v389_v6, %v244_v9 }
 0x11b   :  { %277 = vst.msk [vmem:[%s539_s5 + $0x8] sm:$0xff] %vm74_vm1, %v245_v10 }
 0x120   :  { %v247_v11 = vpop.f32.mrf.mxu1 }
 0x121   :  { %v248_v12 = vadd.f32 %v389_v6, %v247_v11 }
 0x123   :  { %278 = vst.msk [vmem:[%s539_s5 + $0x10] sm:$0xff] %vm74_vm1, %v248_v12 }
 0x124   :  { %v272_v19 = vpop.f32.mrf.mxu3 }
 0x125   :  { %v273_v20 = vadd.f32 %v389_v6, %v272_v19 }
 0x127   :  { %288 = vst.msk [vmem:[%s539_s5 + $0x60] sm:$0xff] %vm74_vm1, %v273_v20 }
 0x128   :  { %v249_v13 = vpop.f32.mrf.mxu1 }
 0x129   :  { %v250_v14 = vadd.f32 %v389_v6, %v249_v13 }
 0x12b   :  { %279 = vst.msk [vmem:[%s539_s5 + $0x18] sm:$0xff] %vm74_vm1, %v250_v14 }
 0x12c   :  { %v274_v23 = vpop.f32.mrf.mxu3 }
 0x130   :  { %v252_v15 = vpop.f32.mrf.mxu1 }
 0x131   :  { %v253_v16 = vadd.f32 %v389_v6, %v252_v15 }
 0x133   :  { %280 = vst.msk [vmem:[%s539_s5 + $0x20] sm:$0xff] %vm74_vm1, %v253_v16 }
 0x138   :  { %v254_v17 = vpop.f32.mrf.mxu1 }
 0x139   :  { %v255_v18 = vadd.f32 %v389_v6, %v254_v17 }
 0x13b   :  { %281 = vst.msk [vmem:[%s539_s5 + $0x28] sm:$0xff] %vm74_vm1, %v255_v18 }
 0x146   :  { %v257_v21 = vpop.f32.mrf.mxu2 }
 0x147   :  { %v258_v22 = vadd.f32 %v389_v6, %v257_v21 }
 0x149   :  { %282 = vst.msk [vmem:[%s539_s5 + $0x30] sm:$0xff] %vm74_vm1, %v258_v22 }
 0x14e   :  { %v259_v24 = vpop.f32.mrf.mxu2 }
 0x14f   :  { %v260_v25 = vadd.f32 %v389_v6, %v259_v24 }
 0x151   :  { %283 = vst.msk [vmem:[%s539_s5 + $0x38] sm:$0xff] %vm74_vm1, %v260_v25 }
 0x156   :  { %v262_v26 = vpop.f32.mrf.mxu2 }
 0x157   :  { %v263_v27 = vadd.f32 %v389_v6, %v262_v26 }
 0x159   :  { %284 = vst.msk [vmem:[%s539_s5 + $0x40] sm:$0xff] %vm74_vm1, %v263_v27 }
 0x15e   :  { %v264_v28 = vpop.f32.mrf.mxu2 }
 0x15f   :  { %v265_v29 = vadd.f32 %v389_v6, %v264_v28 }
 0x161   :  { %285 = vst.msk [vmem:[%s539_s5 + $0x48] sm:$0xff] %vm74_vm1, %v265_v29 }
 0x166   :  { %v267_v30 = vpop.f32.mrf.mxu2 }
 0x167   :  { %v268_v31 = vadd.f32 %v389_v6, %v267_v30 }
 0x169   :  { %286 = vst.msk [vmem:[%s539_s5 + $0x50] sm:$0xff] %vm74_vm1, %v268_v31 }
 0x16e   :  { %v269_v32 = vpop.f32.mrf.mxu2 }
 0x16f   :  { %v270_v33 = vadd.f32 %v389_v6, %v269_v32 }
 0x171   :  { %287 = vst.msk [vmem:[%s539_s5 + $0x58] sm:$0xff] %vm74_vm1, %v270_v33 }

</bundles_post_ra>
